<compile_context>
chip_gen: v6e
topology: v6e:2x2x1
jax: 0.10.0
libtpu: 0.0.40
codegen_flags: <defaults>
</compile_context>

<pallas_src>
import jax
import jax.numpy as jnp
from jax.experimental import pallas as pl
from jax.experimental.pallas import tpu as pltpu

H1 = 128            # hidden 1
H2 = 64             # hidden 2
TB_MAX = 2048       # max batch tile (multiple of 128)
SINGLE_STEP_MAX = 1024   # batches up to this size run as one full-extent step
VMEM_CEIL = 32 << 20     # valid scoped-VMEM limit on v5e/v6e/v7x
VMEM_FLOOR = 16 << 20
VMEM_HEADROOM = 2 << 20


def _cdiv(a, b):
    return -(-a // b)


def _round_up(x, m):
    return _cdiv(x, m) * m


def _critic_kernel(obs_ref, w1_ref, b1_ref, w2_ref, b2_ref, w3t_ref, b3_ref,
                   out_ref):
    # obs_ref: (TB, D) batch tile; weights/biases are VMEM-resident (constant
    # index_map -> DMA'd once); b3 is a single scalar in SMEM.
    x = obs_ref[...]
    h1 = jnp.dot(x, w1_ref[...], preferred_element_type=jnp.float32)
    h1 = jnp.maximum(h1 + b1_ref[...], 0.0)                     # (TB, 128) f32
    h2 = jnp.dot(h1.astype(w2_ref.dtype), w2_ref[...],
                 preferred_element_type=jnp.float32)
    h2 = jnp.maximum(h2 + b2_ref[...], 0.0)                     # (TB, 64)  f32
    # Final layer, batch-on-lanes: (1,64) contracted with (TB,64) on the last
    # dim -> (1, TB).  Emits the value row lane-dense so the output store is a
    # plain unmasked vst and the HBM write is 4 B/row instead of 512 B/row.
    v = jax.lax.dot_general(
        w3t_ref[...], h2.astype(w3t_ref.dtype),
        dimension_numbers=(((1,), (1,)), ((), ())),
        preferred_element_type=jnp.float32)                     # (1, TB) f32
    v = jnp.maximum(v + b3_ref[0], 0.0)
    out_ref[...] = v.astype(out_ref.dtype)


def critic_forward(obs, params, *, matmul_dtype=jnp.bfloat16):
    """obs: (B, ...) -> flattened to (B, D).  Returns (B, 1) float32.

    matmul operands are cast to `matmul_dtype` (bf16 default, f32 accumulation
    on the MXU); pass matmul_dtype=jnp.float32 for strict-tolerance results.
    """
    obs = jnp.asarray(obs, dtype=jnp.float32)
    b = obs.shape[0]
    obs = obs.reshape(b, -1)                       # torch .flatten(1)
    d = obs.shape[1]

    w1, b1, w2, b2, w3, b3 = params
    assert w1.shape[0] == d, f"input_dim mismatch: {w1.shape[0]} vs {d}"

    obs_m = obs.astype(matmul_dtype)
    w1m = jnp.asarray(w1, matmul_dtype)
    w2m = jnp.asarray(w2, matmul_dtype)
    w3t = jnp.asarray(w3, matmul_dtype).reshape(1, H2)   # (64,1) -> (1,64)
    b1f = jnp.asarray(b1, jnp.float32).reshape(1, H1)
    b2f = jnp.asarray(b2, jnp.float32).reshape(1, H2)
    b3f = jnp.asarray(b3, jnp.float32).reshape(1)        # SMEM scalar

    isz = jnp.dtype(matmul_dtype).itemsize

    # --- VMEM accounting (bytes) -------------------------------------------
    # Resident weights/biases are still double-buffered by BlockSpec.
    weight_bytes = 2 * ((d * H1 + H1 * H2 + H2) * isz + (H1 + H2) * 4)
    # Per batch-row: double-buffered obs tile + double-buffered (1,TB) out
    # tile (padded to 8 sublanes) + h1/h2 intermediates (f32 + cast copy).
    row_bytes = 2 * d * isz + 2 * 8 * 4 + (H1 + H2) * (4 + isz)

    if (b <= SINGLE_STEP_MAX
            and weight_bytes + b * row_bytes + VMEM_HEADROOM <= VMEM_CEIL):
        # One full-extent step: no (8,128) block constraints, no padding, no
        # per-step overhead multiplication.
        tb = b
        steps = 1
    else:
        # Tiled path: tile must be a multiple of 128 (lane-dense output block)
        # and is capped so (a) it fits the VMEM budget including the resident
        # weights and (b) the grid has >=2 steps so both v7x TensorCores get
        # work under dimension_semantics=("parallel",).
        avail = VMEM_CEIL - VMEM_HEADROOM - weight_bytes
        cap_rows = max(128, (avail // row_bytes) // 128 * 128)
        tb = min(TB_MAX, cap_rows, _round_up(_cdiv(b, 2), 128))
        steps = _cdiv(b, tb)
        # TODO(synk): for extremely large flattened D (image observations) a
        # reduction grid axis over D chunks would be needed; not implemented.

    vmem_limit = int(min(max(weight_bytes + tb * row_bytes + VMEM_HEADROOM,
                             VMEM_FLOOR), VMEM_CEIL))

    flops = 2 * b * (d * H1 + H1 * H2 + H2)
    bytes_accessed = (b * d * isz                                  # obs read
                      + (d * H1 + H1 * H2 + H2) * isz + (H1 + H2 + 1) * 4
                      + b * 4)                                     # value write
    cost = pl.CostEstimate(flops=flops, transcendentals=0,
                           bytes_accessed=bytes_accessed)

    const = lambda i: (0, 0)          # weights: resident, DMA'd once
    grid_spec = pltpu.PrefetchScalarGridSpec(
        num_scalar_prefetch=0,
        grid=(steps,),
        in_specs=[
            pl.BlockSpec((tb, d), lambda i: (i, 0)),     # obs tile (pipelined)
            pl.BlockSpec((d, H1), const),                # w1
            pl.BlockSpec((1, H1), const),                # b1
            pl.BlockSpec((H1, H2), const),               # w2
            pl.BlockSpec((1, H2), const),                # b2
            pl.BlockSpec((1, H2), const),                # w3 (as a row)
            pl.BlockSpec(memory_space=pltpu.MemorySpace.SMEM),   # b3 scalar
        ],
        out_specs=pl.BlockSpec((1, tb), lambda i: (0, i)),
    )

    out = pl.pallas_call(
        _critic_kernel,
        out_shape=jax.ShapeDtypeStruct((1, b), jnp.float32),
        grid_spec=grid_spec,
        compiler_params=pltpu.CompilerParams(
            dimension_semantics=("parallel",),           # 2 TCs on v7x
            vmem_limit_bytes=vmem_limit),
        cost_estimate=cost,
    )(obs_m, w1m, b1f, w2m, b2f, w3t, b3f)

    # (1, B) -> (B, 1): contiguous reshape, no slice / re-read of a padded array.
    return out.reshape(b, 1)


def init_params(key, input_dim):
    """Deterministic synthetic parameters (PyTorch Linear init, stored (in,out))."""
    k1, k2, k3 = jax.random.split(key, 3)

    def lin(k, fan_in, fan_out):
        bound = 1.0 / jnp.sqrt(fan_in)
        kw, kb = jax.random.split(k)
        w = jax.random.uniform(kw, (fan_in, fan_out), jnp.float32, -bound, bound)
        b = jax.random.uniform(kb, (1, fan_out), jnp.float32, -bound, bound)
        return w, b

    w1, b1 = lin(k1, input_dim, H1)
    w2, b2 = lin(k2, H1, H2)
    w3, b3 = lin(k3, H2, 1)
    return (w1, b1, w2, b2, w3, b3)


if __name__ == "__main__":
    key = jax.random.PRNGKey(0)
    k_obs, k_par, k_mid = jax.random.split(key, 3)

    action_shape = 16                      # Critic.input_dim
    params = init_params(k_par, action_shape)
    w1, b1, w2, b2, w3, b3 = params

    def ref_fwd(o):
        x = o.reshape(o.shape[0], -1)
        h = jnp.maximum(x @ w1 + b1, 0.0)
        h = jnp.maximum(h @ w2 + b2, 0.0)
        return jnp.maximum(h @ w3 + b3, 0.0)

    # 1) tiny batch, single full-extent grid step, default bf16 operands
    obs_small = jax.random.normal(k_obs, (2, 4, 4), dtype=jnp.float32)
    v_small = critic_forward(obs_small, params)
    jax.block_until_ready(v_small)
    assert v_small.shape == (2, 1)
    assert jnp.allclose(v_small, ref_fwd(obs_small), atol=5e-2, rtol=5e-2)

    # 2) medium batch, f32 operands -> strict tolerance, still one grid step
    obs_mid = jax.random.normal(k_mid, (300, 4, 4), dtype=jnp.float32)
    v_mid = critic_forward(obs_mid, params, matmul_dtype=jnp.float32)
    jax.block_until_ready(v_mid)
    assert v_mid.shape == (300, 1)
    assert jnp.allclose(v_mid, ref_fwd(obs_mid), atol=1e-5, rtol=1e-5)

    # 3) large batch -> multi-step pipelined grid with a ragged tail
    #    (2500 rows, tile 1280: 2 steps, last tile clamped, no jnp.pad)
    obs_big = jax.random.normal(jax.random.fold_in(key, 7), (2500, 4, 4),
                                dtype=jnp.float32)
    v_big = critic_forward(obs_big, params)                       # bf16 default
    jax.block_until_ready(v_big)
    assert v_big.shape == (2500, 1)
    assert jnp.allclose(v_big, ref_fwd(obs_big), atol=5e-2, rtol=5e-2)

    v_big32 = critic_forward(obs_big, params, matmul_dtype=jnp.float32)
    jax.block_until_ready(v_big32)
    assert jnp.allclose(v_big32, ref_fwd(obs_big), atol=1e-5, rtol=1e-5)

    # TODO(synk): the PyTorch forward's optional `act` concat / norm_layer are
    # handled outside the kernel (concat before flatten only changes D; the
    # kernel is D-agnostic, and the reference path here is norm_layer=None).
    print("KERNEL_OK")
</pallas_src>

<mosaic_0001>
module attributes {stable_mosaic.version = 11 : i64} {
  func.func @_critic_kernel(%arg0: i32, %arg1: memref<2x16xbf16, #tpu.memory_space<vmem>>, %arg2: memref<16x128xbf16, #tpu.memory_space<vmem>>, %arg3: memref<1x128xf32, #tpu.memory_space<vmem>>, %arg4: memref<128x64xbf16, #tpu.memory_space<vmem>>, %arg5: memref<1x64xf32, #tpu.memory_space<vmem>>, %arg6: memref<1x64xbf16, #tpu.memory_space<vmem>>, %arg7: memref<1xf32, #tpu.memory_space<smem>>, %arg8: memref<1x2xf32, #tpu.memory_space<vmem>>) attributes {dimension_semantics = [#tpu.dimension_semantics<parallel>], iteration_bounds = array<i64: 1>, scalar_prefetch = 0 : i64, scratch_operands = 0 : i64, tpu.core_type = #tpu.core_type<tc>, window_params = [{transform_indices = @transform_0, window_bounds = array<i64: 2, 16>}, {pipeline_mode = #tpu.pipeline_mode<synchronous>, transform_indices = @transform_1, window_bounds = array<i64: 16, 128>}, {pipeline_mode = #tpu.pipeline_mode<synchronous>, transform_indices = @transform_2, window_bounds = array<i64: 1, 128>}, {pipeline_mode = #tpu.pipeline_mode<synchronous>, transform_indices = @transform_3, window_bounds = array<i64: 128, 64>}, {pipeline_mode = #tpu.pipeline_mode<synchronous>, transform_indices = @transform_4, window_bounds = array<i64: 1, 64>}, {pipeline_mode = #tpu.pipeline_mode<synchronous>, transform_indices = @transform_5, window_bounds = array<i64: 1, 64>}, {transform_indices = @transform_6, window_bounds = array<i64: 1>}, {transform_indices = @transform_7, window_bounds = array<i64: 1, 2>}]} {
    %c0 = arith.constant 0 : index
    %c0_0 = arith.constant 0 : index
    %0 = vector.load %arg1[%c0, %c0_0] : memref<2x16xbf16, #tpu.memory_space<vmem>>, vector<2x16xbf16>
    %c0_1 = arith.constant 0 : index
    %c0_2 = arith.constant 0 : index
    %1 = vector.load %arg2[%c0_1, %c0_2] : memref<16x128xbf16, #tpu.memory_space<vmem>>, vector<16x128xbf16>
    %cst = arith.constant dense<0.000000e+00> : vector<2x128xf32>
    %2 = tpu.matmul %0, %1, %cst {dimension_numbers = #tpu.dot_dimension_numbers<[1], [0], [0], [1], [0, 0, 1, 1], [], []>} : vector<2x16xbf16>, vector<16x128xbf16>, vector<2x128xf32> -> vector<2x128xf32>
    %c0_3 = arith.constant 0 : index
    %c0_4 = arith.constant 0 : index
    %3 = vector.load %arg3[%c0_3, %c0_4] : memref<1x128xf32, #tpu.memory_space<vmem>>, vector<1x128xf32>
    %4 = vector.broadcast %3 : vector<1x128xf32> to vector<2x128xf32>
    %5 = arith.addf %2, %4 : vector<2x128xf32>
    %cst_5 = arith.constant 0.000000e+00 : f32
    %6 = vector.broadcast %cst_5 : f32 to vector<2x128xf32>
    %7 = arith.maximumf %5, %6 : vector<2x128xf32>
    %8 = arith.truncf %7 : vector<2x128xf32> to vector<2x128xbf16>
    %c0_6 = arith.constant 0 : index
    %c0_7 = arith.constant 0 : index
    %9 = vector.load %arg4[%c0_6, %c0_7] : memref<128x64xbf16, #tpu.memory_space<vmem>>, vector<128x64xbf16>
    %cst_8 = arith.constant dense<0.000000e+00> : vector<2x64xf32>
    %10 = tpu.matmul %8, %9, %cst_8 {dimension_numbers = #tpu.dot_dimension_numbers<[1], [0], [0], [1], [0, 0, 1, 1], [], []>} : vector<2x128xbf16>, vector<128x64xbf16>, vector<2x64xf32> -> vector<2x64xf32>
    %c0_9 = arith.constant 0 : index
    %c0_10 = arith.constant 0 : index
    %11 = vector.load %arg5[%c0_9, %c0_10] : memref<1x64xf32, #tpu.memory_space<vmem>>, vector<1x64xf32>
    %12 = vector.broadcast %11 : vector<1x64xf32> to vector<2x64xf32>
    %13 = arith.addf %10, %12 : vector<2x64xf32>
    %cst_11 = arith.constant 0.000000e+00 : f32
    %14 = vector.broadcast %cst_11 : f32 to vector<2x64xf32>
    %15 = arith.maximumf %13, %14 : vector<2x64xf32>
    %c0_12 = arith.constant 0 : index
    %c0_13 = arith.constant 0 : index
    %16 = vector.load %arg6[%c0_12, %c0_13] : memref<1x64xbf16, #tpu.memory_space<vmem>>, vector<1x64xbf16>
    %17 = arith.truncf %15 : vector<2x64xf32> to vector<2x64xbf16>
    %cst_14 = arith.constant dense<0.000000e+00> : vector<1x2xf32>
    %18 = tpu.matmul %16, %17, %cst_14 {dimension_numbers = #tpu.dot_dimension_numbers<[1], [1], [0], [0], [0, 0, 1, 0], [], []>} : vector<1x64xbf16>, vector<2x64xbf16>, vector<1x2xf32> -> vector<1x2xf32>
    %c0_15 = arith.constant 0 : index
    %19 = memref.load %arg7[%c0_15] : memref<1xf32, #tpu.memory_space<smem>>
    %20 = vector.broadcast %19 : f32 to vector<1x2xf32>
    %21 = arith.addf %18, %20 : vector<1x2xf32>
    %cst_16 = arith.constant 0.000000e+00 : f32
    %22 = vector.broadcast %cst_16 : f32 to vector<1x2xf32>
    %23 = arith.maximumf %21, %22 : vector<1x2xf32>
    %c0_17 = arith.constant 0 : index
    %c0_18 = arith.constant 0 : index
    %24 = vector.load %arg8[%c0_17, %c0_18] : memref<1x2xf32, #tpu.memory_space<vmem>>, vector<1x2xf32>
    tpu.vector_store %arg8[%c0_17, %c0_18], %23 {strides = array<i32>} : memref<1x2xf32, #tpu.memory_space<vmem>>, vector<1x2xf32>,
    return
  }
  func.func @transform_0(%arg0: i32) -> (i32, i32) {
    %c0_i32 = arith.constant 0 : i32
    %c0_i32_0 = arith.constant 0 : i32
    return %arg0, %c0_i32 : i32, i32
  }
  func.func @transform_1(%arg0: i32) -> (i32, i32) {
    %c0_i32 = arith.constant 0 : i32
    %c0_i32_0 = arith.constant 0 : i32
    %c0_i32_1 = arith.constant 0 : i32
    return %c0_i32, %c0_i32_0 : i32, i32
  }
  func.func @transform_2(%arg0: i32) -> (i32, i32) {
    %c0_i32 = arith.constant 0 : i32
    %c0_i32_0 = arith.constant 0 : i32
    %c0_i32_1 = arith.constant 0 : i32
    return %c0_i32, %c0_i32_0 : i32, i32
  }
  func.func @transform_3(%arg0: i32) -> (i32, i32) {
    %c0_i32 = arith.constant 0 : i32
    %c0_i32_0 = arith.constant 0 : i32
    %c0_i32_1 = arith.constant 0 : i32
    return %c0_i32, %c0_i32_0 : i32, i32
  }
  func.func @transform_4(%arg0: i32) -> (i32, i32) {
    %c0_i32 = arith.constant 0 : i32
    %c0_i32_0 = arith.constant 0 : i32
    %c0_i32_1 = arith.constant 0 : i32
    return %c0_i32, %c0_i32_0 : i32, i32
  }
  func.func @transform_5(%arg0: i32) -> (i32, i32) {
    %c0_i32 = arith.constant 0 : i32
    %c0_i32_0 = arith.constant 0 : i32
    %c0_i32_1 = arith.constant 0 : i32
    return %c0_i32, %c0_i32_0 : i32, i32
  }
  func.func @transform_6(%arg0: i32) -> i32 {
    %c0_i32 = arith.constant 0 : i32
    %c0_i32_0 = arith.constant 0 : i32
    return %c0_i32 : i32
  }
  func.func @transform_7(%arg0: i32) -> (i32, i32) {
    %c0_i32 = arith.constant 0 : i32
    %c0_i32_0 = arith.constant 0 : i32
    return %c0_i32, %arg0 : i32, i32
  }
}

</mosaic_0001>

<bundles_post_ra>
// kernel: tpu_custom_call.1
= control target key start
LH: loop header
LB: loop body
LE: loop exit
PB: predicated region body
PF: predicated region fallthrough
CT: control target
= control target key end

     0   :  { %v363_v1 = vmov 0.0   ;;  %vm364_vm0 = vmmov 0   ;;  %vm45_vm1 = vcmask 130048   ;;  %s451_s0 = inlined_call_operand.vmem [shape: bf16[2,16], index: 0, kind: input, shape index: {}]   ;;  %s452_s1 = inlined_call_operand.vmem [shape: bf16[16,128], index: 1, kind: input, shape index: {}]   ;;  %s453_s2 = inlined_call_operand.vmem [shape: f32[1,128], index: 2, kind: input, shape index: {}]   ;;  %s454_s3 = inlined_call_operand.vmem [shape: bf16[128,64], index: 3, kind: input, shape index: {}]   ;;  %s455_s4 = inlined_call_operand.vmem [shape: f32[1,64], index: 4, kind: input, shape index: {}]   ;;  %s456_s5 = inlined_call_operand.vmem [shape: bf16[1,64], index: 5, kind: input, shape index: {}]   ;;  %s457_s6 = inlined_call_operand.<no memory space> [shape: f32[1], index: 6, kind: input, shape index: {}]   ;;  %s458_s7 = inlined_call_operand.hbm [shape: f32[1,2], index: 7, kind: output, shape index: {}]  }
   0x1   :  { %v332_v0 = vld [vmem:[%s452_s1] sm:$0xff]   ;;  %297 = vmatprep.subr.bf16.mxu0 %v363_v1  ;;  %303 = vmatprep.subr.bf16.mxu1 %v363_v1  ;;  %v333_v3 = vld [vmem:[%s454_s3 + $0x38] sm:$0xff]   ;;  %v334_v4 = vld [vmem:[%s454_s3 + $0x30] sm:$0xff]  }
   0x2   :  { %v29_v2 = vld [vmem:[%s451_s0] sm:$0x1]  ;;  %298 = vmatpush3.bf16.msra.mxu0 %v332_v0  ;;  %299 = vmatprep.mubr.msk.bf16.mxu0 %vm364_vm0, %v363_v1  ;;  %v335_v5 = vld [vmem:[%s454_s3 + $0x28] sm:$0xff]  }
   0x3   :  { %319 = vmatprep.mubr.msk.bf16.mxu1 %vm364_vm0, %v363_v1  ;;  %323 = vmatprep.subr.bf16.mxu0 %v363_v1 }
   0x4   :  { %304 = vmatpush3.bf16.msra.mxu1 %v333_v3 }
   0x5   :  { %300 = vmatmul.mubr.msk.bf16.vlgmr.msra.gmra.mxu0 %vm45_vm1, %v29_v2  ;;  %305 = vmatprep.subr.bf16.mxu1 %v363_v1 }
   0x6   :  { %325 = vmatprep.mubr.msk.bf16.mxu0 %vm364_vm0, %v363_v1 }
   0x8   :  { %306 = vmatpush3.bf16.msra.mxu1 %v334_v4 }
   0x9   :  { %307 = vmatprep.subr.bf16.mxu1 %v363_v1 }
   0xa   :  { %13 = vsyncpa [#allocation4], 0  ;;  %v336_v6 = vld [vmem:[%s454_s3 + $0x20] sm:$0xff]   ;;  %v337_v7 = vld [vmem:[%s454_s3 + $0x18] sm:$0xff]   ;;  %vm207_vm2 = vcmask 523264   ;;  %v206_v29 = vstv %s457_s6  ;;  %vm255_vm3 = vcmask 8192  }
   0xb   :  { %v338_v8 = vld [vmem:[%s454_s3 + $0x10] sm:$0xff]   ;;  %v339_v9 = vld [vmem:[%s454_s3 + $0x8] sm:$0xff]   ;;  %v340_v10 = vld [vmem:[%s454_s3] sm:$0xff]  }
   0xc   :  { %308 = vmatpush3.bf16.msra.mxu1 %v335_v5  ;;  %v271_v11 = vld [vmem:[%s453_s2] ss:$0 sm:$0xff] }
   0xd   :  { %309 = vmatprep.subr.bf16.mxu1 %v363_v1  ;;  %v274_v19 = vld [vmem:[%s455_s4] ss:$0 sm:$0xff]  ;;  %s365_s4 = smov [#allocation3]  }
   0xe   :  { %v203_v28 = vld [vmem:[%s456_s5] sm:$0x1]  ;;  %s263_s25 = sshll.u32 %s365_s4, 4  ;;  %s264_s25 = int_to_ptr.vmem [resolvable:$true] %s263_s25 }
   0xf   :  { %s341_s26 = scalar_lea.vmem %s264_s25, 16  ;;  %s345_s27 = scalar_lea.vmem %s264_s25, 32 }
  0x10   :  { %310 = vmatpush3.bf16.msra.mxu1 %v336_v6  ;;  %p342_p0 = scmp.ne.s32.totalorder %s264_s25, %s341_s26  ;;  %p346_p1 = scmp.lt.s32.totalorder %s264_s25, %s264_s25 }
  0x11   :  { %311 = vmatprep.subr.bf16.mxu1 %v363_v1  ;;  %p347_p2 = scmp.lt.s32.totalorder %s345_s27, %s341_s26 }
  0x13   :  { %p348_p3 = por %p347_p2, %p346_p1 }
  0x14   :  { %312 = vmatpush3.bf16.msra.mxu1 %v337_v7 }
  0x15   :  { %313 = vmatprep.subr.bf16.mxu1 %v363_v1  ;;  %p349_p4 = pnand %p348_p3, %p342_p0 }
  0x18   :  { %314 = vmatpush3.bf16.msra.mxu1 %v338_v8 }
  0x19   :  { %315 = vmatprep.subr.bf16.mxu1 %v363_v1 }
  0x1c   :  { %316 = vmatpush3.bf16.msra.mxu1 %v339_v9 }
  0x1d   :  { %317 = vmatprep.subr.bf16.mxu1 %v363_v1 }
  0x20   :  { %318 = vmatpush3.bf16.msra.mxu1 %v340_v10 }
  0xc5   :  { %v83_v12 = vpop.f32.mrf.mxu0 }
  0xc6   :  { %v84_v13 = vadd.f32 %v271_v11, %v83_v12 }
  0xc7   :  { %v301_v14 = vpop.f32.mrf.mxu0 }
  0xc8   :  { %v89_v15 = vmax.f32 %v84_v13, 0.0 }
  0xc9   :  { %v86_v16 = vpop.f32.mrf.mxu0 }
  0xca   :  { %v90_v17 = vpack.c.bf16 %v89_v15, %v89_v15 }
  0xcb   :  { %v302_v18 = vpop.f32.mrf.mxu0 }
  0xcc   :  { %320 = vmatmul.mubr.bf16.vlgmr.msra.gmra.mxu1 %v90_v17 }
 0x18c   :  { %v196_v20 = vpop.f32.mrf.mxu1 }
 0x18d   :  { %v197_v21 = vadd.f32 %v274_v19, %v196_v20 }
 0x18e   :  { %v321_v22 = vpop.f32.mrf.mxu1 }
 0x18f   :  { %v202_v23 = vmax.f32 %v197_v21, 0.0 }
 0x190   :  { %v199_v24 = vpop.f32.mrf.mxu1 }
 0x191   :  { %v204_v25 = vpack.c.bf16 %v202_v23, %v202_v23 }
 0x192   :  { %v322_v26 = vpop.f32.mrf.mxu1 }
 0x193   :  { %v212_v27 = vsel %vm207_vm2, %v204_v25, 0 }
 0x194   :  { %324 = vmatpush3.bf16.xpose.msra.mxu0 %v212_v27 }
 0x19b   :  { %326 = vmatmul.mubr.msk.bf16.vlgmr.msra.gmra.mxu0 %vm207_vm2, %v203_v28 }
 0x25b   :  { %v248_v30 = vpop.f32.mrf.mxu0 }
 0x25c   :  { %v249_v31 = vadd.f32 %v248_v30, %v206_v29 }
 0x25d   :  { %v327_v32 = vpop.f32.mrf.mxu0 }
 0x25e   :  { %v254_v33 = vmax.f32 %v249_v31, 0.0 }
 0x25f   :  { %v251_v34 = vpop.f32.mrf.mxu0 }
 0x260   :  { %256 = vst.msk [vmem:[#allocation3] sm:$0x1] %vm255_vm3, %v254_v33 }
 0x261   :  { %v328_v35 = vpop.f32.mrf.mxu0 }
 0x262   :  { %352 = shalt.err (!%p349_p4)
}
 0x263   :  { %266 = dma.vmem_to_hbm [thread:$0]  %s264_s25, 16, %s458_s7, [#allocation4]  }
 0x264   :  { %361 = dma.done.wait [#allocation4], 16  }
 0x265   :  { %362 = vsyncadd [#allocation4], 4294967280 }
 0x266   :  { %270 = vsyncpa [#allocation4], 1 }

</bundles_post_ra>
